<compile_context>
chip_gen: v7x
topology: tpu7x:2x2x1
jax: 0.10.0
libtpu: 0.0.40
codegen_flags: <defaults>
</compile_context>

<pallas_src>
import math

import jax
import jax.numpy as jnp
from jax.experimental import pallas as pl
from jax.experimental.pallas import tpu as pltpu

# --- head output dims (from ActionDecoder.__init__) -------------------------
HEAD_DIMS = {
    "belief": 5,
    "physical_type": 6,
    "physical_angle": 1,
    "dorothy_dialogue_move": 16,
    "dorothy_dialogue_type": 5,
    "dorothy_dialogue_slot": 69,
    "wizzard_dialogue_move": 16,
    "wizzard_dialogue_type": 5,
    "wizzard_dialogue_slot": 69,
}
HEAD_ORDER = list(HEAD_DIMS.keys())
TOTAL_OUT = sum(HEAD_DIMS.values())   # 192 real columns
N_PAD = 256                           # lane-dense padded output width


def _head_offsets():
    offs, o = {}, 0
    for name in HEAD_ORDER:
        offs[name] = (o, o + HEAD_DIMS[name])
        o += HEAD_DIMS[name]
    return offs


HEAD_OFFS = _head_offsets()
ANGLE_COL = HEAD_OFFS["physical_angle"][0]   # column 11 -> lives in first 128-lane slab
assert ANGLE_COL < 128


def _round_up(x, m):
    return ((x + m - 1) // m) * m


# --- Pallas kernel -----------------------------------------------------------
def action_decoder_kernel(x_ref, w_ref, b_ref, o_ref):
    # x_ref: (TM, D)      frame-embedding row tile
    # w_ref: (D, 256)     fused weights (cols 192:256 are zero padding)
    # b_ref: (1, 256)     fused bias    (cols 192:256 are zero padding)
    # o_ref: (TM, 256)    fused head outputs
    y = jnp.dot(x_ref[...], w_ref[...], preferred_element_type=jnp.float32)
    y = y + b_ref[...]

    # 180*tanh only on the 128-lane slab that contains the physical-angle
    # column; the select keeps every other column untouched.
    y_lo = y[:, :128]
    col = jax.lax.broadcasted_iota(jnp.int32, (1, 128), 1)
    y_lo = jnp.where(col == ANGLE_COL, 180.0 * jnp.tanh(y_lo), y_lo)

    # Both stores are 128-lane aligned -> unmasked vst.
    o_ref[:, :128] = y_lo.astype(o_ref.dtype)
    o_ref[:, 128:] = y[:, 128:].astype(o_ref.dtype)


# --- tiling policy -----------------------------------------------------------
def _tiling(M, D, vmem_budget_bytes=12 * 1024 * 1024):
    """Return (tm, M_padded).  Single step for tiny problems; otherwise big
    row tiles (>=2 grid steps so v7x can shard the row axis across both TCs),
    capped so double-buffered x/out tiles + weights fit default scoped VMEM."""
    M8 = _round_up(max(M, 8), 8)
    if M8 <= 256:
        # whole problem is a handful of vregs: one grid step, no pipeline overhead
        return M8, M8

    # target ~1024-row tiles but keep at least 2 steps
    tm = min(1024, _round_up(pl.cdiv(M8, 2), 8))

    # VMEM cap: 2*(x tile) + 2*(out tile) + 2*(weights) must fit the budget
    per_row_bytes = 2 * (D + N_PAD) * 4
    weight_bytes = 2 * D * N_PAD * 4
    tm_cap = max(8, (vmem_budget_bytes - weight_bytes) // per_row_bytes)
    tm = max(8, min(tm, (tm_cap // 8) * 8))

    Mp = _round_up(M8, tm)
    return tm, Mp


def action_decoder_fused(x2d, w, b, *, tm):
    """x2d: (Mp, D) f32, Mp % tm == 0; w: (D, 256); b: (1, 256) -> (Mp, 256)."""
    Mp, D = x2d.shape
    assert Mp % tm == 0
    return pl.pallas_call(
        action_decoder_kernel,
        out_shape=jax.ShapeDtypeStruct((Mp, N_PAD), jnp.float32),
        grid_spec=pltpu.PrefetchScalarGridSpec(
            num_scalar_prefetch=0,
            grid=(Mp // tm,),
            in_specs=[
                pl.BlockSpec((tm, D), lambda i: (i, 0)),
                pl.BlockSpec((D, N_PAD), lambda i: (0, 0)),   # VMEM-resident
                pl.BlockSpec((1, N_PAD), lambda i: (0, 0)),   # VMEM-resident
            ],
            out_specs=pl.BlockSpec((tm, N_PAD), lambda i: (i, 0)),
        ),
        compiler_params=pltpu.CompilerParams(
            dimension_semantics=("parallel",),
        ),
    )(x2d, w, b)


# --- parameter construction (deterministic, PyTorch-Linear-style init) -------
def init_params(key, emb_dim):
    bound = 1.0 / math.sqrt(emb_dim)
    ws, bs = [], []
    for i, name in enumerate(HEAD_ORDER):
        kw, kb = jax.random.split(jax.random.fold_in(key, i))
        out_dim = HEAD_DIMS[name]
        ws.append(jax.random.uniform(kw, (emb_dim, out_dim), jnp.float32, -bound, bound))
        bs.append(jax.random.uniform(kb, (out_dim,), jnp.float32, -bound, bound))
    w = jnp.concatenate(ws, axis=1)             # (D, 192)
    b = jnp.concatenate(bs, axis=0)[None, :]    # (1, 192)
    # zero-pad to 256 lane-dense columns; padded cols must stay exactly zero
    w = jnp.pad(w, ((0, 0), (0, N_PAD - TOTAL_OUT)))
    b = jnp.pad(b, ((0, 0), (0, N_PAD - TOTAL_OUT)))
    return w, b


# --- forward -----------------------------------------------------------------
def action_decoder_forward(frame_emb, w, b):
    """frame_emb: (B, T, D).  Returns the 9-tuple matching the PyTorch module."""
    B, T, D = frame_emb.shape
    M = B * T
    x2d = frame_emb.reshape(M, D).astype(jnp.float32)

    tm, Mp = _tiling(M, D)
    if Mp != M:
        x2d = jnp.pad(x2d, ((0, Mp - M), (0, 0)))

    fused = action_decoder_fused(x2d, w, b, tm=tm)           # (Mp, 256)
    fused = fused[:M, :TOTAL_OUT].reshape(B, T, TOTAL_OUT)   # drop row/col padding

    outs = []
    for name in HEAD_ORDER:
        lo, hi = HEAD_OFFS[name]
        outs.append(fused[..., lo:hi])
    return tuple(outs)


# --- reference (plain JAX) ----------------------------------------------------
def reference_forward(frame_emb, w, b):
    y = frame_emb @ w[:, :TOTAL_OUT] + b[0, :TOTAL_OUT]
    outs = []
    for name in HEAD_ORDER:
        lo, hi = HEAD_OFFS[name]
        part = y[..., lo:hi]
        if name == "physical_angle":
            part = 180.0 * jnp.tanh(part)
        outs.append(part)
    return tuple(outs)


if __name__ == "__main__":
    key = jax.random.PRNGKey(0)
    B, T, D = 2, 8, 32  # small shapes; temporal_embedding_dim = 32

    k_x, k_p = jax.random.split(key)
    frame_emb = jax.random.normal(k_x, (B, T, D), jnp.float32)
    w, b = init_params(k_p, D)

    outs = action_decoder_forward(frame_emb, w, b)
    outs = jax.block_until_ready(outs)

    # sanity check vs. plain-JAX reference
    refs = reference_forward(frame_emb, w, b)
    for o, r in zip(outs, refs):
        assert o.shape == r.shape
        assert jnp.allclose(o, r, atol=1e-4, rtol=1e-4), (
            f"mismatch: max err {jnp.max(jnp.abs(o - r))}"
        )

    # also exercise the multi-step / padded-M path once (ragged M, >=2 grid steps)
    B2, T2 = 7, 111   # M = 777 -> padded, 2 large row tiles
    frame_emb2 = jax.random.normal(jax.random.fold_in(key, 99), (B2, T2, D), jnp.float32)
    outs2 = jax.block_until_ready(action_decoder_forward(frame_emb2, w, b))
    refs2 = reference_forward(frame_emb2, w, b)
    for o, r in zip(outs2, refs2):
        assert o.shape == r.shape
        assert jnp.allclose(o, r, atol=1e-4, rtol=1e-4), (
            f"mismatch (large M): max err {jnp.max(jnp.abs(o - r))}"
        )

    print("KERNEL_OK")
</pallas_src>

<mosaic_0001>
module attributes {stable_mosaic.version = 11 : i64} {
  func.func @action_decoder_kernel(%arg0: i32, %arg1: memref<16x32xf32, #tpu.memory_space<vmem>>, %arg2: memref<32x256xf32, #tpu.memory_space<vmem>>, %arg3: memref<1x256xf32, #tpu.memory_space<vmem>>, %arg4: memref<16x256xf32, #tpu.memory_space<vmem>>) attributes {dimension_semantics = [#tpu.dimension_semantics<parallel>], iteration_bounds = array<i64: 1>, scalar_prefetch = 0 : i64, scratch_operands = 0 : i64, tpu.core_type = #tpu.core_type<tc>, window_params = [{transform_indices = @transform_0, window_bounds = array<i64: 16, 32>}, {pipeline_mode = #tpu.pipeline_mode<synchronous>, transform_indices = @transform_1, window_bounds = array<i64: 32, 256>}, {pipeline_mode = #tpu.pipeline_mode<synchronous>, transform_indices = @transform_2, window_bounds = array<i64: 1, 256>}, {transform_indices = @transform_3, window_bounds = array<i64: 16, 256>}]} {
    %c0 = arith.constant 0 : index
    %c0_0 = arith.constant 0 : index
    %0 = vector.load %arg1[%c0, %c0_0] : memref<16x32xf32, #tpu.memory_space<vmem>>, vector<16x32xf32>
    %c0_1 = arith.constant 0 : index
    %c0_2 = arith.constant 0 : index
    %1 = vector.load %arg2[%c0_1, %c0_2] : memref<32x256xf32, #tpu.memory_space<vmem>>, vector<32x256xf32>
    %cst = arith.constant dense<0.000000e+00> : vector<16x256xf32>
    %2 = tpu.matmul %0, %1, %cst {dimension_numbers = #tpu.dot_dimension_numbers<[1], [0], [0], [1], [0, 0, 1, 1], [], []>} : vector<16x32xf32>, vector<32x256xf32>, vector<16x256xf32> -> vector<16x256xf32>
    %c0_3 = arith.constant 0 : index
    %c0_4 = arith.constant 0 : index
    %3 = vector.load %arg3[%c0_3, %c0_4] : memref<1x256xf32, #tpu.memory_space<vmem>>, vector<1x256xf32>
    %4 = vector.broadcast %3 : vector<1x256xf32> to vector<16x256xf32>
    %5 = arith.addf %2, %4 : vector<16x256xf32>
    %6 = vector.extract_strided_slice %5 {offsets = [0, 0], sizes = [16, 128], strides = [1, 1]} : vector<16x256xf32> to vector<16x128xf32>
    %7 = tpu.iota {dimensions = array<i32: 1>} : vector<1x128xi32>
    %c11_i32 = arith.constant 11 : i32
    %8 = vector.broadcast %c11_i32 : i32 to vector<1x128xi32>
    %9 = arith.cmpi eq, %7, %8 : vector<1x128xi32>
    %10 = math.tanh %6 : vector<16x128xf32>
    %cst_5 = arith.constant 1.800000e+02 : f32
    %11 = vector.broadcast %cst_5 : f32 to vector<16x128xf32>
    %12 = arith.mulf %11, %10 : vector<16x128xf32>
    %13 = vector.shape_cast %9 : vector<1x128xi1> to vector<1x128xi1>
    %14 = vector.broadcast %13 : vector<1x128xi1> to vector<16x128xi1>
    %15 = arith.select %14, %12, %6 : vector<16x128xi1>, vector<16x128xf32>
    %c0_6 = arith.constant 0 : index
    %c0_7 = arith.constant 0 : index
    %16 = vector.load %arg4[%c0_6, %c0_7] : memref<16x256xf32, #tpu.memory_space<vmem>>, vector<16x128xf32>
    tpu.vector_store %arg4[%c0_6, %c0_7], %15 {strides = array<i32>} : memref<16x256xf32, #tpu.memory_space<vmem>>, vector<16x128xf32>,
    %17 = vector.extract_strided_slice %5 {offsets = [0, 128], sizes = [16, 128], strides = [1, 1]} : vector<16x256xf32> to vector<16x128xf32>
    %c0_8 = arith.constant 0 : index
    %c128 = arith.constant 128 : index
    %18 = vector.load %arg4[%c0_8, %c128] : memref<16x256xf32, #tpu.memory_space<vmem>>, vector<16x128xf32>
    tpu.vector_store %arg4[%c0_8, %c128], %17 {strides = array<i32>} : memref<16x256xf32, #tpu.memory_space<vmem>>, vector<16x128xf32>,
    return
  }
  func.func @transform_0(%arg0: i32) -> (i32, i32) {
    %c0_i32 = arith.constant 0 : i32
    %c0_i32_0 = arith.constant 0 : i32
    return %arg0, %c0_i32 : i32, i32
  }
  func.func @transform_1(%arg0: i32) -> (i32, i32) {
    %c0_i32 = arith.constant 0 : i32
    %c0_i32_0 = arith.constant 0 : i32
    %c0_i32_1 = arith.constant 0 : i32
    return %c0_i32, %c0_i32_0 : i32, i32
  }
  func.func @transform_2(%arg0: i32) -> (i32, i32) {
    %c0_i32 = arith.constant 0 : i32
    %c0_i32_0 = arith.constant 0 : i32
    %c0_i32_1 = arith.constant 0 : i32
    return %c0_i32, %c0_i32_0 : i32, i32
  }
  func.func @transform_3(%arg0: i32) -> (i32, i32) {
    %c0_i32 = arith.constant 0 : i32
    %c0_i32_0 = arith.constant 0 : i32
    return %arg0, %c0_i32 : i32, i32
  }
}

</mosaic_0001>

<bundles_post_ra>
// kernel: tpu_custom_call.1
= control target key start
LH: loop header
LB: loop body
LE: loop exit
PB: predicated region body
PF: predicated region fallthrough
CT: control target
= control target key end

     0   :  { %8 = vsyncpa [#allocation3], 0  ;;  %s353_s0 = inlined_call_operand.hbm [shape: f32[16,32], index: 0, kind: input, shape index: {}]   ;;  %s354_s1 = inlined_call_operand.hbm [shape: f32[32,256], index: 1, kind: input, shape index: {}]   ;;  %s355_s2 = inlined_call_operand.vmem [shape: f32[1,256], index: 2, kind: input, shape index: {}]   ;;  %s356_s3 = inlined_call_operand.hbm [shape: f32[16,256], index: 3, kind: output, shape index: {}]  }
   0x1   :  { %9 = vsyncpa [#allocation6], 0 }
   0x2   :  { %10 = vsyncpa [#allocation4], 0  ;;  %s280_s12 = smov [#allocation2]   ;;  %s208_s16 = scalar_lea.hbm %s353_s0, 256 }
   0x3   :  { %s16_s13 = sshll.u32 %s280_s12, 4  ;;  %p209_p0 = scmp.ne.s32.totalorder %s353_s0, %s208_s16  ;;  %s17_s13 = int_to_ptr.vmem [resolvable:$true] %s16_s13 }
   0x4   :  { %p212_p1 = scmp.lt.u32.totalorder %s208_s16, %s353_s0 }
   0x6   :  { %p214_p2 = pnand %p212_p1, %p209_p0 }
   0x8   :  { %217 = shalt.err (!%p214_p2)
}
   0x9   :  { %s218_s21 = scalar_lea.vmem %s17_s13, 256  ;;  %p223_p4 = scmp.lt.s32.totalorder %s17_s13, %s17_s13 }
   0xa   :  { %p219_p3 = scmp.ne.s32.totalorder %s17_s13, %s218_s21  ;;  %p224_p5 = scmp.lt.s32.totalorder %s218_s21, %s218_s21 }
   0xc   :  { %p225_p6 = por %p224_p5, %p223_p4 }
   0xe   :  { %p226_p7 = pnand %p225_p6, %p219_p3 }
  0x10   :  { %229 = shalt.err (!%p226_p7)
}
  0x11   :  { %s281_s22 = smov 128   ;;  %s282_s23 = smov 8  }
  0x12   :  { %22 = dma.hbm_to_vmem [thread:$0]  %s353_s0, 256, %s17_s13, [#allocation3], %s281_s22, %s281_s22, %s282_s23  }
  0x13   :  { %s283_s26 = smov [#allocation5]   ;;  %s230_s30 = scalar_lea.hbm %s354_s1, 1024 }
  0x14   :  { %s28_s27 = sshll.u32 %s283_s26, 4  ;;  %p231_p8 = scmp.ne.s32.totalorder %s354_s1, %s230_s30  ;;  %s29_s27 = int_to_ptr.vmem [resolvable:$true] %s28_s27 }
  0x15   :  { %p234_p9 = scmp.lt.u32.totalorder %s230_s30, %s354_s1 }
  0x17   :  { %p236_p10 = pnand %p234_p9, %p231_p8 }
  0x19   :  { %239 = shalt.err (!%p236_p10)
}
  0x1a   :  { %s240_s8 = scalar_lea.vmem %s29_s27, 1024  ;;  %p245_p12 = scmp.lt.s32.totalorder %s29_s27, %s29_s27 }
  0x1b   :  { %p241_p11 = scmp.ne.s32.totalorder %s29_s27, %s240_s8  ;;  %p246_p13 = scmp.lt.s32.totalorder %s240_s8, %s240_s8 }
  0x1d   :  { %p247_p0 = por %p246_p13, %p245_p12 }
  0x1f   :  { %p248_p1 = pnand %p247_p0, %p241_p11 }
  0x21   :  { %251 = shalt.err (!%p248_p1)
}
  0x22   :  { %s284_s0 = smov 256   ;;  %s285_s9 = smov 16  }
  0x23   :  { %34 = dma.hbm_to_vmem [thread:$0]  %s354_s1, 1024, %s29_s27, [#allocation6], %s284_s0, %s284_s0, %s285_s9  }
  0x24   :  { %274 = dma.done.wait [#allocation3], 256  }
  0x25   :  { %275 = vsyncadd [#allocation3], 4294967040 }
  0x26   :  { %276 = dma.done.wait [#allocation6], 1024  }
  0x27   :  { %277 = vsyncadd [#allocation6], 4294966272  ;;  %v286_v0 = vmov 0.0   ;;  %v46_v1 = vld [vmem:[#allocation5 + $0x8] sm:$0xff]  ;;  %v48_v2 = vld [vmem:[#allocation5 + $0x18] sm:$0xff]  ;;  %vm65_vm0 = vcmask 261120   ;;  %v55_v15 = vlaneseq }
  0x28   :  { %136 = vmatprep.mubr.f32.mxu0 %v286_v0  ;;  %142 = vmatprep.mubr.f32.mxu1 %v286_v0  ;;  %v45_v3 = vld [vmem:[#allocation5] sm:$0xff]  ;;  %v184_v4 = vpack.c.bf16 %v48_v2, %v46_v1  ;;  %v47_v5 = vld [vmem:[#allocation5 + $0x10] sm:$0xff]  ;;  %v50_v6 = vld [vmem:[#allocation5 + $0x28] sm:$0xff]  ;;  %s287_s13 = smov [#allocation7]  }
  0x29   :  { %v52_v7 = vld [vmem:[#allocation5 + $0x38] sm:$0xff]  ;;  %v186_v8 = vpack.c.bf16 %v47_v5, %v45_v3  ;;  %v49_v10 = vld [vmem:[#allocation5 + $0x20] sm:$0xff]  ;;  %v51_v11 = vld [vmem:[#allocation5 + $0x30] sm:$0xff]  ;;  %v56_v16 = vshrl.u32 %v55_v15, 7  ;;  %v150_v30 = vand.u32 127, %v55_v15 }
  0x2a   :  { %v188_v9 = vpack.c.bf16 %v52_v7, %v50_v6  ;;  %185 = vmatprep.subr.bf16.mxu0 %v184_v4  ;;  %192 = vmatprep.subr.bf16.mxu1 %v184_v4  ;;  %v190_v12 = vpack.c.bf16 %v51_v11, %v49_v10  ;;  %v43_v13 = vld [vmem:[#allocation2] sm:$0xff]  ;;  %v44_v14 = vld [vmem:[#allocation2 + $0x8] sm:$0xff] }
  0x2b   :  { %187 = vmatpush1.bf16.msra.mxu0 %v186_v8  ;;  %194 = vmatpush1.bf16.msra.mxu1 %v186_v8  ;;  %v57_v17 = vsub.s32 0, %v56_v16  ;;  %v53_v18 = vld [vmem:[%s355_s2] sm:$0x3]  ;;  %v61_v19 = vsub.s32 1, %v56_v16  ;;  %vm151_vm1 = vcmp.eq.s32.totalorder %v150_v30, 11  ;;  %s169_s2 = sshll.u32 %s287_s13, 4  ;;  %s170_s2 = int_to_ptr.vmem [resolvable:$true] %s169_s2 }
  0x2c   :  { %189 = vmatprep.subr.bf16.mxu0 %v188_v9  ;;  %193 = vmatprep.subr.bf16.mxu1 %v188_v9  ;;  %s252_s14 = scalar_lea.vmem %s170_s2, 512  ;;  %p257_p3 = scmp.lt.s32.totalorder %s170_s2, %s170_s2 }
  0x2d   :  { %v58_v20 = vrot.slane %v53_v18, %v57_v17  ;;  %v62_v21 = vrot.slane %v53_v18, %v61_v19  ;;  %p253_p2 = scmp.ne.s32.totalorder %s170_s2, %s252_s14  ;;  %p258_p4 = scmp.lt.s32.totalorder %s252_s14, %s252_s14 }
  0x2f   :  { %191 = vmatpush1.bf16.msra.mxu0 %v190_v12  ;;  %195 = vmatpush1.bf16.msra.mxu1 %v190_v12  ;;  %p259_p5 = por %p258_p4, %p257_p3 }
  0x31   :  { %p260_p6 = pnand %p259_p5, %p253_p2 }
  0x32   :  { %182 = vmatmul.mubr.msk.f32.vlgmr.msra.gmra.mrb[0].mxu0 %vm65_vm0, %v43_v13  ;;  %183 = vmatmul.mubr.msk.f32.vlgmr.msra.gmra.mrb[0].mxu1 %vm65_vm0, %v44_v14 }
 0x105   :  { %v138_v22 = vpop.f32.mrb[0].mxu0  ;;  %v144_v23 = vpop.f32.mrb[0].mxu1 }
 0x106   :  { %v139_v24 = vadd.f32 %v138_v22, %v58_v20  ;;  %v145_v25 = vadd.f32 %v144_v23, %v58_v20  ;;  %v140_v26 = vpop.f32.mrb[1].mxu0  ;;  %v146_v27 = vpop.f32.mrb[1].mxu1 }
 0x107   :  { %v141_v28 = vadd.f32 %v140_v26, %v62_v21  ;;  %v147_v29 = vadd.f32 %v146_v27, %v62_v21 }
 0x108   :  { %204 = vtanh.f32 %v139_v24 }
 0x109   :  { %206 = vtanh.f32 %v145_v25  ;;  %162 = vst [vmem:[#allocation7 + $0x8] sm:$0xff] %v141_v28  ;;  %163 = vst [vmem:[#allocation7 + $0x18] sm:$0xff] %v147_v29 }
 0x112   :  { %v205_v31 = vpop.eup %204 }
 0x113   :  { %v207_v32 = vpop.eup %206  ;;  %v154_v33 = vmul.f32 180.0, %v205_v31 }
 0x114   :  { %v155_v34 = vmul.f32 180.0, %v207_v32 }
 0x115   :  { %v158_v35 = vsel %vm151_vm1, %v154_v33, %v139_v24 }
 0x116   :  { %160 = vst [vmem:[#allocation7] sm:$0xff] %v158_v35  ;;  %v159_v36 = vsel %vm151_vm1, %v155_v34, %v145_v25 }
 0x117   :  { %161 = vst [vmem:[#allocation7 + $0x10] sm:$0xff] %v159_v36 }
 0x118   :  { %263 = shalt.err (!%p260_p6)
}
 0x119   :  { %s264_s17 = scalar_lea.hbm %s356_s3, 512 }
 0x11a   :  { %p265_p7 = scmp.ne.s32.totalorder %s356_s3, %s264_s17  ;;  %p268_p8 = scmp.lt.u32.totalorder %s264_s17, %s356_s3 }
 0x11c   :  { %p270_p9 = pnand %p268_p8, %p265_p7 }
 0x11e   :  { %273 = shalt.err (!%p270_p9)
}
 0x11f   :  { %175 = dma.vmem_to_hbm [thread:$0]  %s170_s2, 512, %s356_s3, [#allocation4], %s284_s0, %s284_s0, %s285_s9  }
 0x120   :  { %278 = dma.done.wait [#allocation4], 512  }
 0x121   :  { %279 = vsyncadd [#allocation4], 4294966784 }
 0x122   :  { %179 = vsyncpa [#allocation3], 1 }
 0x123   :  { %180 = vsyncpa [#allocation6], 1 }
 0x124   :  { %181 = vsyncpa [#allocation4], 1 }

</bundles_post_ra>
